<compile_context>
chip_gen: v5e
topology: v5e:2x2
jax: 0.10.0
libtpu: 0.0.40
codegen_flags: <defaults>
</compile_context>

<pallas_src>
import math
import jax
import jax.numpy as jnp
from jax.experimental import pallas as pl
from jax.experimental.pallas import tpu as pltpu

# ---------------- configuration (small, consistent with the module) ----------
B = 8                 # batch (number of graphs); 8 = one sublane group
N_NODES = 5           # nodes per graph (synthetic)
IN_GNN = 16           # inputDimGNN
IN_SENSOR = 8         # inputDimSensor
DIM_TARGET = 4        # target feature dim (target is [B, 1, DIM_TARGET])
DIM_AREA = 4          # area feature dim   (area   is [B, 1, DIM_AREA])
IN_TARGET = DIM_TARGET + DIM_AREA   # inputDimTarget
H_GNN = 32            # hiddenDimGNN
H_MLP = 32            # hiddenDimMLP
H_FC = 32             # hiddenDimFC
OUT_STIM = 4          # outputDimStimuli
OUT_CLAUSE = 3        # outputDimClause

PAD = 128             # lane-padded width for all fused weights / activations

# Lane layout of the packed layer-1 activation slab / K-row layout of w1:
ROW_GNN = 0                       # lanes  0:17 -> cat(node_sum, edge_sum) (gnn1 input)
ROW_SENSOR = 24                   # lanes 24:32 -> sensor        (mlpSensor1 input)
ROW_TARGET = 32                   # lanes 32:40 -> cat(target, area) (mlpTarget1 input)


# ---------------- Pallas kernel ----------------------------------------------
def mlp_mlp_kernel(acts_ref, w_ref, b_ref, out_ref):
    """acts_ref: [B,128] lane-packed layer-1 input
       w_ref:    [4,128,128] packed block-diagonal weights
       b_ref:    [4,128]     packed biases
       out_ref:  [B,128]     lanes 0:4 = stimuli, 4:7 = cause, rest 0."""
    dot = lambda a, w: jnp.dot(a, w, preferred_element_type=jnp.float32)
    relu = lambda v: jnp.maximum(v, 0.0)

    # Fused layer 1: one matmul against the block-diag [gnn1|mlpSensor1|mlpTarget1].
    h1 = relu(dot(acts_ref[...], w_ref[0]) + b_ref[0:1, :])   # [B,128]; lanes 96:128 == 0

    # Fused layer 2: block-diag [gnn3|mlpSensor3|mlpTarget2]; lanes 0:96 == cat(hG,hS,hT).
    h2 = relu(dot(h1, w_ref[1]) + b_ref[1:2, :])

    # linearFC1 on cat(hG,hS,hT) (lanes 0:96); lanes 0:32 == relu(linearFC1(...)).
    h3 = relu(dot(h2, w_ref[2]) + b_ref[2:3, :])

    # Merged output head: [linearStimuli | linearCause] in one lane-dense store.
    out_ref[...] = dot(h3, w_ref[3]) + b_ref[3:4, :]


# ---------------- parameter init (deterministic, xavier_uniform, relu gain) --
def _xavier_uniform(key, fan_out, fan_in, gain):
    bound = gain * math.sqrt(6.0 / (fan_in + fan_out))
    return jax.random.uniform(key, (fan_out, fan_in), jnp.float32, -bound, bound)


def _bias(key, fan_out, fan_in):
    # PyTorch Linear default bias init: U(-1/sqrt(fan_in), 1/sqrt(fan_in))
    bound = 1.0 / math.sqrt(fan_in)
    return jax.random.uniform(key, (fan_out,), jnp.float32, -bound, bound)


def init_params(key):
    gain = math.sqrt(2.0)  # calculate_gain('relu')
    layers = {
        "gnn1":          (H_GNN, IN_GNN + 1),
        "gnn3":          (H_FC,  H_GNN),
        "mlpSensor1":    (H_MLP, IN_SENSOR),
        "mlpSensor3":    (H_FC,  H_MLP),
        "mlpTarget1":    (H_MLP, IN_TARGET),
        "mlpTarget2":    (H_FC,  H_MLP),
        "linearFC1":     (H_FC,  3 * H_FC),
        "linearStimuli": (OUT_STIM, H_FC),
        "linearCause":   (OUT_CLAUSE, H_FC),
    }
    params = {}
    keys = jax.random.split(key, 2 * len(layers))
    for i, (name, (fo, fi)) in enumerate(layers.items()):
        params[name + "_w"] = _xavier_uniform(keys[2 * i], fo, fi, gain)
        params[name + "_b"] = _bias(keys[2 * i + 1], fo, fi)
    return params


# ---------------- host-side weight/bias packing (done once) ------------------
def pack_params(p):
    f32 = jnp.float32
    z = jnp.zeros((PAD, PAD), f32)

    # layer 1: block-diagonal [gnn1 | mlpSensor1 | mlpTarget1]
    w1 = z.at[ROW_GNN:ROW_GNN + IN_GNN + 1, 0:H_GNN].set(p["gnn1_w"].T)       # rows 0:17
    w1 = w1.at[ROW_SENSOR:ROW_SENSOR + IN_SENSOR,
               H_GNN:H_GNN + H_MLP].set(p["mlpSensor1_w"].T)                  # rows 24:32
    w1 = w1.at[ROW_TARGET:ROW_TARGET + IN_TARGET,
               H_GNN + H_MLP:H_GNN + 2 * H_MLP].set(p["mlpTarget1_w"].T)      # rows 32:40

    # layer 2: block-diagonal [gnn3 | mlpSensor3 | mlpTarget2]
    w2 = z.at[0:32, 0:32].set(p["gnn3_w"].T)
    w2 = w2.at[32:64, 32:64].set(p["mlpSensor3_w"].T)
    w2 = w2.at[64:96, 64:96].set(p["mlpTarget2_w"].T)

    # linearFC1 acts on cat(hG, hSensor, hTarget) = lanes 0:96 of h2
    w3 = z.at[0:3 * H_FC, 0:H_FC].set(p["linearFC1_w"].T)

    # merged output head: [linearStimuli | linearCause], lane-dense padded to 128
    w4 = z.at[0:H_FC, 0:OUT_STIM].set(p["linearStimuli_w"].T)
    w4 = w4.at[0:H_FC, OUT_STIM:OUT_STIM + OUT_CLAUSE].set(p["linearCause_w"].T)

    wslab = jnp.stack([w1, w2, w3, w4], axis=0)        # [4, 128, 128]

    bslab = jnp.zeros((4, PAD), f32)
    bslab = bslab.at[0, 0:32].set(p["gnn1_b"])
    bslab = bslab.at[0, 32:64].set(p["mlpSensor1_b"])
    bslab = bslab.at[0, 64:96].set(p["mlpTarget1_b"])
    bslab = bslab.at[1, 0:32].set(p["gnn3_b"])
    bslab = bslab.at[1, 32:64].set(p["mlpSensor3_b"])
    bslab = bslab.at[1, 64:96].set(p["mlpTarget2_b"])
    bslab = bslab.at[2, 0:32].set(p["linearFC1_b"])
    bslab = bslab.at[3, 0:OUT_STIM].set(p["linearStimuli_b"])
    bslab = bslab.at[3, OUT_STIM:OUT_STIM + OUT_CLAUSE].set(p["linearCause_b"])

    # Correctness guard: the fused linearFC1 / merged head rely on the pad
    # lanes of every slab being exactly zero (so ReLU(0)=0 propagates).
    assert not bool(jnp.any(wslab[:, :, 96:]))           # pad output lanes of w1,w2
    assert not bool(jnp.any(wslab[2, :, H_FC:]))         # pad output lanes of w3
    assert not bool(jnp.any(wslab[3, :, OUT_STIM + OUT_CLAUSE:]))  # pad lanes of w4
    assert not bool(jnp.any(bslab[0:2, 96:]))
    assert not bool(jnp.any(bslab[2, H_FC:]))
    assert not bool(jnp.any(bslab[3, OUT_STIM + OUT_CLAUSE:]))
    return wslab, bslab


# ---------------- wrapper -----------------------------------------------------
@jax.jit
def mlp_mlp_forward(node_feats, edge_norms, sensor, target, area, wslab, bslab):
    f32 = jnp.float32
    # DGL-glue replacement + lane packing (all fused by XLA into one small op):
    node_sum = jnp.sum(node_feats.astype(f32), axis=1)               # [B, IN_GNN]
    edge_sum = jnp.sum(edge_norms.astype(f32), axis=1)               # [B, 1]
    hta = jnp.concatenate([target[:, 0, :], area[:, 0, :]],
                          axis=1).astype(f32)                        # [B, IN_TARGET]

    gap1 = jnp.zeros((B, ROW_SENSOR - (IN_GNN + 1)), f32)            # lanes 17:24
    tail = jnp.zeros((B, PAD - (ROW_TARGET + IN_TARGET)), f32)       # lanes 40:128
    acts = jnp.concatenate(
        [node_sum, edge_sum, gap1, sensor.astype(f32), hta, tail], axis=1)  # [B, 128]

    vmem = pl.BlockSpec(memory_space=pltpu.MemorySpace.VMEM)
    out = pl.pallas_call(
        mlp_mlp_kernel,
        out_shape=jax.ShapeDtypeStruct((B, PAD), jnp.float32),       # lane-dense output
        in_specs=[vmem, vmem, vmem],
        out_specs=vmem,
    )(acts, wslab, bslab)

    # split the merged head outside the kernel
    return out[:, :OUT_STIM], out[:, OUT_STIM:OUT_STIM + OUT_CLAUSE]


# ---------------- pure-JAX reference (for correctness check) ------------------
def reference_forward(node_feats, edge_norms, sensor, target, area, p):
    def lin(x, name):
        return x @ p[name + "_w"].T + p[name + "_b"]
    relu = lambda v: jnp.maximum(v, 0.0)

    feat = jnp.concatenate(
        [jnp.sum(node_feats, axis=1), jnp.sum(edge_norms, axis=1)], axis=-1)
    hG = relu(lin(feat, "gnn1"))
    hG = relu(lin(hG, "gnn3"))
    hS = relu(lin(sensor.astype(jnp.float32), "mlpSensor1"))
    hS = relu(lin(hS, "mlpSensor3"))
    hTA = jnp.concatenate([target[:, 0, :], area[:, 0, :]], axis=1).astype(jnp.float32)
    hT = relu(lin(hTA, "mlpTarget1"))
    hT = relu(lin(hT, "mlpTarget2"))
    h = relu(lin(jnp.concatenate([hG, hS, hT], axis=1), "linearFC1"))
    return lin(h, "linearStimuli"), lin(h, "linearCause")


# ---------------- main --------------------------------------------------------
if __name__ == "__main__":
    key = jax.random.PRNGKey(0)
    k_param, k_nf, k_en, k_se, k_tg, k_ar = jax.random.split(key, 6)

    params = init_params(k_param)
    wslab, bslab = pack_params(params)          # packed once, reused every call

    node_feats = jax.random.normal(k_nf, (B, N_NODES, IN_GNN), jnp.float32)
    edge_norms = jax.random.normal(k_en, (B, N_NODES, 1), jnp.float32)
    sensor = jax.random.normal(k_se, (B, IN_SENSOR), jnp.float32)
    target = jax.random.normal(k_tg, (B, 1, DIM_TARGET), jnp.float32)
    area = jax.random.normal(k_ar, (B, 1, DIM_AREA), jnp.float32)

    stim, cause = mlp_mlp_forward(node_feats, edge_norms, sensor, target, area,
                                  wslab, bslab)
    jax.block_until_ready((stim, cause))

    stim_ref, cause_ref = reference_forward(node_feats, edge_norms, sensor,
                                            target, area, params)
    assert stim.shape == (B, OUT_STIM) and cause.shape == (B, OUT_CLAUSE)
    assert jnp.allclose(stim, stim_ref, atol=1e-4, rtol=1e-4)
    assert jnp.allclose(cause, cause_ref, atol=1e-4, rtol=1e-4)

    print("KERNEL_OK")
</pallas_src>

<mosaic_0001>
module attributes {stable_mosaic.version = 11 : i64} {
  func.func @mlp_mlp_kernel(%arg0: memref<8x128xf32, #tpu.memory_space<vmem>>, %arg1: memref<4x128x128xf32, #tpu.memory_space<vmem>>, %arg2: memref<4x128xf32, #tpu.memory_space<vmem>>, %arg3: memref<8x128xf32, #tpu.memory_space<vmem>>) attributes {dimension_semantics = [], scalar_prefetch = 0 : i64, scratch_operands = 0 : i64, tpu.core_type = #tpu.core_type<tc>} {
    %c0 = arith.constant 0 : index
    %c0_0 = arith.constant 0 : index
    %0 = vector.load %arg0[%c0, %c0_0] : memref<8x128xf32, #tpu.memory_space<vmem>>, vector<8x128xf32>
    %c0_1 = arith.constant 0 : index
    %c0_2 = arith.constant 0 : index
    %c0_3 = arith.constant 0 : index
    %1 = vector.load %arg1[%c0_1, %c0_2, %c0_3] : memref<4x128x128xf32, #tpu.memory_space<vmem>>, vector<1x128x128xf32>
    %2 = vector.shape_cast %1 : vector<1x128x128xf32> to vector<128x128xf32>
    %cst = arith.constant dense<0.000000e+00> : vector<8x128xf32>
    %3 = tpu.matmul %0, %2, %cst {dimension_numbers = #tpu.dot_dimension_numbers<[1], [0], [0], [1], [0, 0, 1, 1], [], []>} : vector<8x128xf32>, vector<128x128xf32>, vector<8x128xf32> -> vector<8x128xf32>
    %c0_4 = arith.constant 0 : index
    %c0_5 = arith.constant 0 : index
    %4 = vector.load %arg2[%c0_4, %c0_5] : memref<4x128xf32, #tpu.memory_space<vmem>>, vector<1x128xf32>
    %5 = vector.broadcast %4 : vector<1x128xf32> to vector<8x128xf32>
    %6 = arith.addf %3, %5 : vector<8x128xf32>
    %cst_6 = arith.constant 0.000000e+00 : f32
    %7 = vector.broadcast %cst_6 : f32 to vector<8x128xf32>
    %8 = arith.maximumf %6, %7 : vector<8x128xf32>
    %c1 = arith.constant 1 : index
    %c0_7 = arith.constant 0 : index
    %c0_8 = arith.constant 0 : index
    %9 = vector.load %arg1[%c1, %c0_7, %c0_8] : memref<4x128x128xf32, #tpu.memory_space<vmem>>, vector<1x128x128xf32>
    %10 = vector.shape_cast %9 : vector<1x128x128xf32> to vector<128x128xf32>
    %cst_9 = arith.constant dense<0.000000e+00> : vector<8x128xf32>
    %11 = tpu.matmul %8, %10, %cst_9 {dimension_numbers = #tpu.dot_dimension_numbers<[1], [0], [0], [1], [0, 0, 1, 1], [], []>} : vector<8x128xf32>, vector<128x128xf32>, vector<8x128xf32> -> vector<8x128xf32>
    %c1_10 = arith.constant 1 : index
    %c0_11 = arith.constant 0 : index
    %12 = vector.load %arg2[%c1_10, %c0_11] : memref<4x128xf32, #tpu.memory_space<vmem>>, vector<1x128xf32>
    %13 = vector.broadcast %12 : vector<1x128xf32> to vector<8x128xf32>
    %14 = arith.addf %11, %13 : vector<8x128xf32>
    %cst_12 = arith.constant 0.000000e+00 : f32
    %15 = vector.broadcast %cst_12 : f32 to vector<8x128xf32>
    %16 = arith.maximumf %14, %15 : vector<8x128xf32>
    %c2 = arith.constant 2 : index
    %c0_13 = arith.constant 0 : index
    %c0_14 = arith.constant 0 : index
    %17 = vector.load %arg1[%c2, %c0_13, %c0_14] : memref<4x128x128xf32, #tpu.memory_space<vmem>>, vector<1x128x128xf32>
    %18 = vector.shape_cast %17 : vector<1x128x128xf32> to vector<128x128xf32>
    %cst_15 = arith.constant dense<0.000000e+00> : vector<8x128xf32>
    %19 = tpu.matmul %16, %18, %cst_15 {dimension_numbers = #tpu.dot_dimension_numbers<[1], [0], [0], [1], [0, 0, 1, 1], [], []>} : vector<8x128xf32>, vector<128x128xf32>, vector<8x128xf32> -> vector<8x128xf32>
    %c2_16 = arith.constant 2 : index
    %c0_17 = arith.constant 0 : index
    %20 = vector.load %arg2[%c2_16, %c0_17] : memref<4x128xf32, #tpu.memory_space<vmem>>, vector<1x128xf32>
    %21 = vector.broadcast %20 : vector<1x128xf32> to vector<8x128xf32>
    %22 = arith.addf %19, %21 : vector<8x128xf32>
    %cst_18 = arith.constant 0.000000e+00 : f32
    %23 = vector.broadcast %cst_18 : f32 to vector<8x128xf32>
    %24 = arith.maximumf %22, %23 : vector<8x128xf32>
    %c3 = arith.constant 3 : index
    %c0_19 = arith.constant 0 : index
    %c0_20 = arith.constant 0 : index
    %25 = vector.load %arg1[%c3, %c0_19, %c0_20] : memref<4x128x128xf32, #tpu.memory_space<vmem>>, vector<1x128x128xf32>
    %26 = vector.shape_cast %25 : vector<1x128x128xf32> to vector<128x128xf32>
    %cst_21 = arith.constant dense<0.000000e+00> : vector<8x128xf32>
    %27 = tpu.matmul %24, %26, %cst_21 {dimension_numbers = #tpu.dot_dimension_numbers<[1], [0], [0], [1], [0, 0, 1, 1], [], []>} : vector<8x128xf32>, vector<128x128xf32>, vector<8x128xf32> -> vector<8x128xf32>
    %c3_22 = arith.constant 3 : index
    %c0_23 = arith.constant 0 : index
    %28 = vector.load %arg2[%c3_22, %c0_23] : memref<4x128xf32, #tpu.memory_space<vmem>>, vector<1x128xf32>
    %29 = vector.broadcast %28 : vector<1x128xf32> to vector<8x128xf32>
    %30 = arith.addf %27, %29 : vector<8x128xf32>
    %c0_24 = arith.constant 0 : index
    %c0_25 = arith.constant 0 : index
    %31 = vector.load %arg3[%c0_24, %c0_25] : memref<8x128xf32, #tpu.memory_space<vmem>>, vector<8x128xf32>
    tpu.vector_store %arg3[%c0_24, %c0_25], %30 {strides = array<i32>} : memref<8x128xf32, #tpu.memory_space<vmem>>, vector<8x128xf32>,
    return
  }
}

</mosaic_0001>

<bundles_post_ra>
// kernel: mlp_mlp_forward.1
= control target key start
LH: loop header
LB: loop body
LE: loop exit
PB: predicated region body
PF: predicated region fallthrough
CT: control target
= control target key end

     0   :  { %8 = vsyncpa [#allocation3], 0  ;;  %s228_s15 = smov [#allocation2]   ;;  %s229_s17 = smov 128   ;;  %s272_s0 = inlined_call_operand.vmem [shape: f32[8,128], index: 0, kind: input, shape index: {}]   ;;  %s273_s1 = inlined_call_operand.hbm [shape: f32[4,128,128], index: 1, kind: input, shape index: {}]   ;;  %s274_s2 = inlined_call_operand.vmem [shape: f32[4,128], index: 2, kind: input, shape index: {}]   ;;  %s275_s3 = inlined_call_operand.vmem [shape: f32[8,128], index: 3, kind: output, shape index: {}]  }
   0x1   :  { %s15_s14 = sshll.u32 %s273_s1, 4  ;;  %s17_s16 = sshll.u32 %s228_s15, 4  ;;  %s16_s14 = int_to_ptr.hbm [resolvable:$true] %s15_s14  ;;  %s18_s16 = int_to_ptr.vmem [resolvable:$true] %s17_s16 }
   0x2   :  { %s230_s18 = smov 8  }
   0x3   :  { %23 = dma.hbm_to_vmem [thread:$0]  %s16_s14, 8192, %s18_s16, [#allocation3], %s229_s17, %s229_s17, %s230_s18  }
   0x4   :  { %226 = dma.done.wait [#allocation3], 8192  }
   0x5   :  { %227 = vsyncadd [#allocation3], 4294959104  ;;  %v46_v0 = vld [vmem:[#allocation2 + $0x78] sm:$0xff]  ;;  %v45_v1 = vld [vmem:[#allocation2 + $0x70] sm:$0xff] }
   0x6   :  { %49 = vmatpush.msra.mxu0 %v46_v0  ;;  %v44_v2 = vld [vmem:[#allocation2 + $0x68] sm:$0xff]  ;;  %v43_v3 = vld [vmem:[#allocation2 + $0x60] sm:$0xff]  ;;  %v86_v4 = vld [vmem:[#allocation2 + $0xf8] sm:$0xff] }
   0x7   :  { %v42_v5 = vld [vmem:[#allocation2 + $0x58] sm:$0xff]  ;;  %89 = vmatpush.msra.mxu1 %v86_v4  ;;  %v85_v6 = vld [vmem:[#allocation2 + $0xf0] sm:$0xff]  ;;  %v84_v7 = vld [vmem:[#allocation2 + $0xe8] sm:$0xff] }
   0x8   :  { %50 = vmatpush.msra.mxu0 %v45_v1  ;;  %v41_v8 = vld [vmem:[#allocation2 + $0x50] sm:$0xff]  ;;  %v83_v9 = vld [vmem:[#allocation2 + $0xe0] sm:$0xff]  ;;  %v40_v10 = vld [vmem:[#allocation2 + $0x48] sm:$0xff] }
   0x9   :  { %90 = vmatpush.msra.mxu1 %v85_v6  ;;  %v82_v11 = vld [vmem:[#allocation2 + $0xd8] sm:$0xff]  ;;  %v39_v12 = vld [vmem:[#allocation2 + $0x40] sm:$0xff]  ;;  %v81_v13 = vld [vmem:[#allocation2 + $0xd0] sm:$0xff] }
   0xa   :  { %51 = vmatpush.msra.mxu0 %v44_v2  ;;  %v38_v14 = vld [vmem:[#allocation2 + $0x38] sm:$0xff]  ;;  %v80_v15 = vld [vmem:[#allocation2 + $0xc8] sm:$0xff]  ;;  %v37_v16 = vld [vmem:[#allocation2 + $0x30] sm:$0xff] }
   0xb   :  { %91 = vmatpush.msra.mxu1 %v84_v7  ;;  %v79_v17 = vld [vmem:[#allocation2 + $0xc0] sm:$0xff]  ;;  %v36_v18 = vld [vmem:[#allocation2 + $0x28] sm:$0xff]  ;;  %v78_v19 = vld [vmem:[#allocation2 + $0xb8] sm:$0xff] }
   0xc   :  { %52 = vmatpush.msra.mxu0 %v43_v3  ;;  %v35_v20 = vld [vmem:[#allocation2 + $0x20] sm:$0xff]  ;;  %v77_v21 = vld [vmem:[#allocation2 + $0xb0] sm:$0xff]  ;;  %v34_v22 = vld [vmem:[#allocation2 + $0x18] sm:$0xff] }
   0xd   :  { %92 = vmatpush.msra.mxu1 %v83_v9  ;;  %v76_v23 = vld [vmem:[#allocation2 + $0xa8] sm:$0xff]  ;;  %v33_v24 = vld [vmem:[#allocation2 + $0x10] sm:$0xff]  ;;  %v75_v25 = vld [vmem:[#allocation2 + $0xa0] sm:$0xff] }
   0xe   :  { %53 = vmatpush.msra.mxu0 %v42_v5  ;;  %v32_v26 = vld [vmem:[#allocation2 + $0x8] sm:$0xff]  ;;  %v74_v27 = vld [vmem:[#allocation2 + $0x98] sm:$0xff]  ;;  %v31_v28 = vld [vmem:[#allocation2] sm:$0xff] }
   0xf   :  { %93 = vmatpush.msra.mxu1 %v82_v11  ;;  %v30_v29 = vld [vmem:[%s272_s0] sm:$0xff]  ;;  %v73_v30 = vld [vmem:[#allocation2 + $0x90] sm:$0xff]  ;;  %v72_v31 = vld [vmem:[#allocation2 + $0x88] sm:$0xff] }
  0x10   :  { %54 = vmatpush.msra.mxu0 %v41_v8  ;;  %v71_v32 = vld [vmem:[#allocation2 + $0x80] sm:$0xff]  ;;  %v126_v33 = vld [vmem:[#allocation2 + $0x178] sm:$0xff]  ;;  %v125_v34 = vld [vmem:[#allocation2 + $0x170] sm:$0xff] }
  0x11   :  { %94 = vmatpush.msra.mxu1 %v81_v13  ;;  %129 = vmatpush.msra.mxu2 %v126_v33  ;;  %v124_v35 = vld [vmem:[#allocation2 + $0x168] sm:$0xff]  ;;  %v123_v36 = vld [vmem:[#allocation2 + $0x160] sm:$0xff]  ;;  %v122_v37 = vld [vmem:[#allocation2 + $0x158] sm:$0xff] }
  0x12   :  { %55 = vmatpush.msra.mxu0 %v40_v10  ;;  %v121_v38 = vld [vmem:[#allocation2 + $0x150] sm:$0xff]  ;;  %v120_v39 = vld [vmem:[#allocation2 + $0x148] sm:$0xff]  ;;  %v119_v40 = vld [vmem:[#allocation2 + $0x140] sm:$0xff] }
  0x13   :  { %95 = vmatpush.msra.mxu1 %v80_v15  ;;  %130 = vmatpush.msra.mxu2 %v125_v34  ;;  %v118_v41 = vld [vmem:[#allocation2 + $0x138] sm:$0xff]  ;;  %v117_v42 = vld [vmem:[#allocation2 + $0x130] sm:$0xff]  ;;  %v116_v43 = vld [vmem:[#allocation2 + $0x128] sm:$0xff] }
  0x14   :  { %56 = vmatpush.msra.mxu0 %v39_v12  ;;  %v115_v44 = vld [vmem:[#allocation2 + $0x120] sm:$0xff]  ;;  %v114_v45 = vld [vmem:[#allocation2 + $0x118] sm:$0xff]  ;;  %v113_v50 = vld [vmem:[#allocation2 + $0x110] sm:$0xff] }
  0x15   :  { %96 = vmatpush.msra.mxu1 %v79_v17  ;;  %131 = vmatpush.msra.mxu2 %v124_v35  ;;  %v198_v46 = vld [vmem:[%s274_s2] ss:$0 sm:$0xff]  ;;  %v112_v51 = vld [vmem:[#allocation2 + $0x108] sm:$0xff]  ;;  %v166_v53 = vld [vmem:[#allocation2 + $0x1f8] sm:$0xff] }
  0x16   :  { %57 = vmatpush.msra.mxu0 %v38_v14  ;;  %v111_v52 = vld [vmem:[#allocation2 + $0x100] sm:$0xff]  ;;  %v165_v54 = vld [vmem:[#allocation2 + $0x1f0] sm:$0xff]  ;;  %169 = vmatpush.msra.mxu3 %v166_v53  ;;  %v164_v55 = vld [vmem:[#allocation2 + $0x1e8] sm:$0xff] }
  0x17   :  { %97 = vmatpush.msra.mxu1 %v78_v19  ;;  %132 = vmatpush.msra.mxu2 %v123_v36  ;;  %v163_v56 = vld [vmem:[#allocation2 + $0x1e0] sm:$0xff]  ;;  %v162_v57 = vld [vmem:[#allocation2 + $0x1d8] sm:$0xff]  ;;  %v161_v58 = vld [vmem:[#allocation2 + $0x1d0] sm:$0xff] }
  0x18   :  { %58 = vmatpush.msra.mxu0 %v37_v16  ;;  %170 = vmatpush.msra.mxu3 %v165_v54  ;;  %v160_v59 = vld [vmem:[#allocation2 + $0x1c8] sm:$0xff]  ;;  %v159_v60 = vld [vmem:[#allocation2 + $0x1c0] sm:$0xff]  ;;  %v158_v61 = vld [vmem:[#allocation2 + $0x1b8] sm:$0xff] }
  0x19   :  { %98 = vmatpush.msra.mxu1 %v77_v21  ;;  %133 = vmatpush.msra.mxu2 %v122_v37  ;;  %v157_v62 = vld [vmem:[#allocation2 + $0x1b0] sm:$0xff]  ;;  %v156_v63 = vld [vmem:[#allocation2 + $0x1a8] sm:$0xff]  ;;  %v155_v0 = vld [vmem:[#allocation2 + $0x1a0] sm:$0xff] }
  0x1a   :  { %59 = vmatpush.msra.mxu0 %v36_v18  ;;  %171 = vmatpush.msra.mxu3 %v164_v55  ;;  %v154_v1 = vld [vmem:[#allocation2 + $0x198] sm:$0xff]  ;;  %v199_v2 = vld [vmem:[%s274_s2 + $0x1] ss:$0 sm:$0xff]  ;;  %v153_v6 = vld [vmem:[#allocation2 + $0x190] sm:$0xff] }
  0x1b   :  { %99 = vmatpush.msra.mxu1 %v76_v23  ;;  %134 = vmatpush.msra.mxu2 %v121_v38  ;;  %v152_v7 = vld [vmem:[#allocation2 + $0x188] sm:$0xff]  ;;  %v151_v8 = vld [vmem:[#allocation2 + $0x180] sm:$0xff] }
  0x1c   :  { %60 = vmatpush.msra.mxu0 %v35_v20  ;;  %172 = vmatpush.msra.mxu3 %v163_v56  ;;  %v200_v9 = vld [vmem:[%s274_s2 + $0x2] ss:$0 sm:$0xff]  ;;  %v201_v13 = vld [vmem:[%s274_s2 + $0x3] ss:$0 sm:$0xff] }
  0x1d   :  { %100 = vmatpush.msra.mxu1 %v75_v25  ;;  %135 = vmatpush.msra.mxu2 %v120_v39 }
  0x1e   :  { %61 = vmatpush.msra.mxu0 %v34_v22  ;;  %173 = vmatpush.msra.mxu3 %v162_v57 }
  0x1f   :  { %101 = vmatpush.msra.mxu1 %v74_v27  ;;  %136 = vmatpush.msra.mxu2 %v119_v40 }
  0x20   :  { %62 = vmatpush.msra.mxu0 %v33_v24  ;;  %174 = vmatpush.msra.mxu3 %v161_v58 }
  0x21   :  { %102 = vmatpush.msra.mxu1 %v73_v30  ;;  %137 = vmatpush.msra.mxu2 %v118_v41 }
  0x22   :  { %63 = vmatpush.msra.mxu0 %v32_v26  ;;  %175 = vmatpush.msra.mxu3 %v160_v59 }
  0x23   :  { %103 = vmatpush.msra.mxu1 %v72_v31  ;;  %138 = vmatpush.msra.mxu2 %v117_v42 }
  0x24   :  { %64 = vmatpush.msra.mxu0 %v31_v28  ;;  %176 = vmatpush.msra.mxu3 %v159_v60 }
  0x25   :  { %65 = vmatmul.f32.vlgmr.msra.gmra.mxu0 %v30_v29  ;;  %104 = vmatpush.msra.mxu1 %v71_v32 }
  0x26   :  { %139 = vmatpush.msra.mxu2 %v116_v43  ;;  %177 = vmatpush.msra.mxu3 %v158_v61 }
  0x28   :  { %140 = vmatpush.msra.mxu2 %v115_v44  ;;  %178 = vmatpush.msra.mxu3 %v157_v62 }
  0x2a   :  { %141 = vmatpush.msra.mxu2 %v114_v45  ;;  %179 = vmatpush.msra.mxu3 %v156_v63 }
  0x2c   :  { %142 = vmatpush.msra.mxu2 %v113_v50  ;;  %180 = vmatpush.msra.mxu3 %v155_v0 }
  0x2e   :  { %143 = vmatpush.msra.mxu2 %v112_v51  ;;  %181 = vmatpush.msra.mxu3 %v154_v1 }
  0x30   :  { %144 = vmatpush.msra.mxu2 %v111_v52  ;;  %182 = vmatpush.msra.mxu3 %v153_v6 }
  0x32   :  { %183 = vmatpush.msra.mxu3 %v152_v7 }
  0x34   :  { %184 = vmatpush.msra.mxu3 %v151_v8 }
  0xa2   :  { %v66_v47 = vpop.f32.mrf.mxu0 }
  0xa3   :  { %v67_v48 = vadd.f32 %v198_v46, %v66_v47 }
  0xa5   :  { %v69_v49 = vmax.f32 %v67_v48, 0.0 }
  0xa7   :  { %105 = vmatmul.f32.vlgmr.msra.gmra.mxu1 %v69_v49 }
 0x124   :  { %v106_v3 = vpop.f32.mrf.mxu1 }
 0x125   :  { %v107_v4 = vadd.f32 %v199_v2, %v106_v3 }
 0x127   :  { %v109_v5 = vmax.f32 %v107_v4, 0.0 }
 0x129   :  { %145 = vmatmul.f32.vlgmr.msra.gmra.mxu2 %v109_v5 }
 0x1ac   :  { %v146_v10 = vpop.f32.mrf.mxu2 }
 0x1ad   :  { %v147_v11 = vadd.f32 %v200_v9, %v146_v10 }
 0x1af   :  { %v149_v12 = vmax.f32 %v147_v11, 0.0 }
 0x1b1   :  { %185 = vmatmul.f32.vlgmr.msra.gmra.mxu3 %v149_v12 }
 0x234   :  { %v186_v14 = vpop.f32.mrf.mxu3 }
 0x235   :  { %v187_v15 = vadd.f32 %v201_v13, %v186_v14 }
 0x237   :  { %189 = vst [vmem:[%s275_s3] sm:$0xff] %v187_v15 }
 0x238   :  { %194 = vsyncpa [#allocation3], 1 }

</bundles_post_ra>
